<compile_context>
chip_gen: v7x
topology: tpu7x:2x2x1
jax: 0.10.0
libtpu: 0.0.40
codegen_flags: <defaults>
</compile_context>

<pallas_src>
import numpy as np
import jax
import jax.numpy as jnp
from jax.experimental import pallas as pl
from jax.experimental.pallas import tpu as pltpu


# ----------------------------------------------------------------------------
# J1 Bessel function (Abramowitz & Stegun style approximation), used only for
# deterministic host-side mask construction.
# ----------------------------------------------------------------------------
def _j1(x):
    x = np.asarray(x, dtype=np.float64)
    ax = np.abs(x)

    # |x| < 8 : rational approximation
    y = x * x
    num = x * (72362614232.0 + y * (-7895059235.0 + y * (242396853.1 +
          y * (-2972611.439 + y * (15704.48260 + y * (-30.16036606))))))
    den = (144725228442.0 + y * (2300535178.0 + y * (18583304.74 +
          y * (99447.43394 + y * (376.9991397 + y)))))
    small = num / den

    # |x| >= 8 : asymptotic form
    z = 8.0 / np.maximum(ax, 1e-30)
    y2 = z * z
    xx = ax - 2.356194491
    p1 = (1.0 + y2 * (0.183105e-2 + y2 * (-0.3516396496e-4 +
          y2 * (0.2457520174e-5 + y2 * (-0.240337019e-6)))))
    p2 = (0.04687499995 + y2 * (-0.2002690873e-3 + y2 * (0.8449199096e-5 +
          y2 * (-0.88228987e-6 + y2 * 0.105787412e-6))))
    big = np.sqrt(0.636619772 / np.maximum(ax, 1e-30)) * \
          (np.cos(xx) * p1 - z * np.sin(xx) * p2)
    big = big * np.sign(x)

    return np.where(ax < 8.0, small, big)


# ----------------------------------------------------------------------------
# Minimal GridCoords stand-in: packed (fftshifted) sky-plane pixel centers.
# TODO(synk): real mpol.GridCoords has more machinery; only the packed
#             centers needed for the beam mask are reproduced here.
# ----------------------------------------------------------------------------
def packed_centers_2d(cell_size, npix):
    centers = cell_size * (np.arange(npix) - npix // 2).astype(np.float64)
    x2d, y2d = np.meshgrid(centers, centers, indexing="xy")
    # "packed" format = fftshifted along both image axes
    return np.fft.fftshift(x2d), np.fft.fftshift(y2d)


# ----------------------------------------------------------------------------
# Host-side (float64) primary-beam mask construction, matching the module.
# Speed of light kept at 2.998e8 for parity with the original module.
# ----------------------------------------------------------------------------
def uniform_mask_np(cell_size, npix, nchan, chan_freqs, dish_radius):
    assert dish_radius > 0.0, "Dish radius must be positive"
    chan_freqs = np.asarray(chan_freqs, dtype=np.float64).reshape(-1)
    assert chan_freqs.shape[0] == nchan, "Length of chan_freqs must equal nchan"
    ratio = 2.0 * dish_radius * chan_freqs.reshape(nchan, 1, 1) / 299800000.0
    ratio_cube = np.tile(ratio, (1, npix, npix))
    px, py = packed_centers_2d(cell_size, npix)
    r_2d = np.sqrt(px ** 2 + py ** 2)
    r_2d_rads = r_2d * np.pi / 180.0 / 60.0 / 60.0
    r_cube = np.tile(r_2d_rads, (nchan, 1, 1))
    r_normed = np.pi * r_cube * ratio_cube
    with np.errstate(divide="ignore", invalid="ignore"):
        airy = (2.0 * _j1(r_normed) / np.where(r_normed == 0.0, 1.0, r_normed)) ** 2
    return np.where(r_normed > 0.0, airy, 1.0)   # float64, (nchan, npix, npix)


def obscured_mask_np(cell_size, npix, nchan, chan_freqs, dish_radius,
                     dish_obscured_radius):
    assert dish_obscured_radius is not None, \
        "Obscured dish requires kwarg 'dish_obscured_radius'"
    assert dish_radius > 0.0 and dish_obscured_radius > 0.0
    assert dish_radius > dish_obscured_radius
    chan_freqs = np.asarray(chan_freqs, dtype=np.float64).reshape(-1)
    assert chan_freqs.shape[0] == nchan
    ratio = 2.0 * dish_radius * chan_freqs.reshape(nchan, 1, 1) / 299800000.0
    ratio_cube = np.tile(ratio, (1, npix, npix))
    px, py = packed_centers_2d(cell_size, npix)
    r_2d = np.sqrt(px ** 2 + py ** 2)
    r_2d_rads = r_2d * np.pi / 180.0 / 60.0 / 60.0
    r_cube = np.tile(r_2d_rads, (nchan, 1, 1))
    eps = dish_obscured_radius / dish_radius
    r_normed = np.pi * r_cube * ratio_cube
    norm_factor = (1.0 - eps ** 2) ** 2
    safe_r = np.where(r_normed == 0.0, 1.0, r_normed)
    with np.errstate(divide="ignore", invalid="ignore"):
        val = (_j1(r_normed) / safe_r - eps * _j1(eps * r_normed) / safe_r) ** 2
        val = val / norm_factor
    return np.where(r_normed > 0.0, val, 1.0)


# ----------------------------------------------------------------------------
# Pallas kernel: out = pb_mask * cube  (elementwise)
# ----------------------------------------------------------------------------
def _pb_mul_kernel(mask_ref, cube_ref, out_ref):
    # Mask is stored narrower (bfloat16 by default); upcast in-register.
    # bf16->f32 convert is free VPU filler in a DMA-bound kernel.
    out_ref[...] = mask_ref[...].astype(out_ref.dtype) * cube_ref[...]


_TARGET_BLOCK_BYTES = 6 << 20   # per-ref f32 block target (~6 MiB)
_MIN_STEPS = 8                  # keep >= 8 grid steps when possible (v7x 2 TCs + pipelining)
_VMEM_LIMIT_BYTES = 48 << 20    # fits v5e/v6e (128 MiB) and v7x (64 MiB)


def _plan_tiling(total, cube_itemsize):
    """Pick (lane, rows, tile_r) such that rows * lane == total exactly (no pad),
    lane is a multiple of 128, rows and tile_r are multiples of 8, and tile_r
    divides rows (all stores are full, unmasked vst).  Returns None if the
    element count cannot be laid out this way (caller falls back to XLA)."""
    for lane in (512, 256, 128):
        if total % (8 * lane) == 0:
            break
    else:
        return None
    rows = total // lane
    max_tile_r = max(8, (_TARGET_BLOCK_BYTES // (lane * cube_itemsize)) // 8 * 8)

    # tile_r = 8*d where d divides rows//8.  Prefer (a) grid >= _MIN_STEPS,
    # then (b) the largest block that still satisfies (a).
    m = rows // 8
    best = None   # (min(grid, _MIN_STEPS), tile_r)
    i = 1
    while i * i <= m:
        if m % i == 0:
            for d in (i, m // i):
                t = 8 * d
                if t > max_tile_r:
                    continue
                score = (min(rows // t, _MIN_STEPS), t)
                if best is None or score > best:
                    best = score
        i += 1
    tile_r = best[1] if best is not None else 8
    return lane, rows, tile_r


def _pb_multiply_pallas(mask_2d, cube_2d, plan, out_dtype, donate_cube):
    lane, rows, tile_r = plan
    spec = pl.BlockSpec((tile_r, lane), lambda i: (i, 0))
    total = rows * lane
    bytes_accessed = total * (mask_2d.dtype.itemsize
                              + cube_2d.dtype.itemsize
                              + np.dtype(out_dtype).itemsize)
    return pl.pallas_call(
        _pb_mul_kernel,
        out_shape=jax.ShapeDtypeStruct((rows, lane), out_dtype),
        grid=(rows // tile_r,),
        in_specs=[spec, spec],
        out_specs=spec,
        compiler_params=pltpu.CompilerParams(
            dimension_semantics=("parallel",),     # both TCs on v7x split the row tiles
            vmem_limit_bytes=_VMEM_LIMIT_BYTES,
        ),
        cost_estimate=pl.CostEstimate(
            flops=total, transcendentals=0, bytes_accessed=bytes_accessed),
        # Saves the output HBM allocation (bytes moved unchanged); always valid
        # now that there is no pad temporary.
        input_output_aliases=({1: 0} if donate_cube else {}),
    )(mask_2d, cube_2d)


class PrimaryBeamCube:
    """JAX/Pallas port of mpol PrimaryBeamCube.

    forward(cube) == pb_mask * cube, elementwise, cube shape (nchan, npix, npix).

    The mask is built in float64 on host at __init__ and stored on device in
    `mask_dtype` (bfloat16 by default for ~17% less HBM traffic; pass
    jnp.float32 if full single precision is needed).  It is also pre-reshaped
    once into the lane-dense 2D slab consumed by the kernel.
    """

    def __init__(self, cell_size, npix, nchan=1, chan_freqs=None,
                 dish_type=None, dish_radius=None, dish_obscured_radius=None,
                 cube_dtype=jnp.float32, mask_dtype=jnp.bfloat16):
        assert dish_type is None or dish_type in ("uniform", "obscured"), \
            "Provided dish_type must be 'uniform' or 'obscured'"
        if chan_freqs is not None:
            chan_freqs = np.asarray(chan_freqs, dtype=np.float64).reshape(-1)
            assert chan_freqs.shape[0] == nchan, \
                "Length of chan_freqs must be equal to nchan"

        self.nchan = nchan
        self.npix = npix
        self.shape = (nchan, npix, npix)
        self.cube_dtype = jnp.dtype(cube_dtype)

        if dish_type is None:
            mask64 = np.ones(self.shape, dtype=np.float64)
        elif dish_type == "uniform":
            mask64 = uniform_mask_np(cell_size, npix, nchan, chan_freqs,
                                     dish_radius)
        else:  # "obscured"
            mask64 = obscured_mask_np(cell_size, npix, nchan, chan_freqs,
                                      dish_radius, dish_obscured_radius)

        # Device-resident parameter (narrow dtype; kernel upcasts in-register).
        self.pb_mask = jnp.asarray(mask64, dtype=mask_dtype)

        # Plan the tiling once (depends only on static shape / dtype) and
        # pre-reshape the mask once into the kernel's 2D slab.
        total = int(np.prod(self.shape))
        self._plan = _plan_tiling(total, self.cube_dtype.itemsize)
        if self._plan is not None:
            lane, rows, _ = self._plan
            self._mask_2d = self.pb_mask.reshape(rows, lane)
        else:
            self._mask_2d = None

    def forward(self, cube, donate_cube=False):
        assert cube.shape == self.shape
        if self._plan is None:
            # TODO(synk): element counts not divisible by 1024 would need
            # masked partial stores; fall back to plain XLA multiply instead.
            return self.pb_mask.astype(cube.dtype) * cube
        lane, rows, _ = self._plan
        cube_2d = cube.reshape(rows, lane)          # metadata-only reshape
        out_2d = _pb_multiply_pallas(self._mask_2d, cube_2d, self._plan,
                                     self.cube_dtype, donate_cube)
        return out_2d.reshape(self.shape)

    __call__ = forward


if __name__ == "__main__":
    cell_size = 0.05          # arcsec / pixel
    dish_radius = 6.0         # meters
    key = jax.random.PRNGKey(0)
    key_a, key_c = jax.random.split(key)

    # --- Case A: uniform dish, float32 mask, kernel path (grid > 1) --------
    nchan, npix = 4, 64
    chan_freqs = np.array([2.30e11, 2.31e11, 2.32e11, 2.33e11])  # Hz
    pb_a = PrimaryBeamCube(cell_size, npix, nchan=nchan, chan_freqs=chan_freqs,
                           dish_type="uniform", dish_radius=dish_radius,
                           mask_dtype=jnp.float32)
    cube_a = jax.random.uniform(key_a, (nchan, npix, npix), dtype=jnp.float32)
    out_a = jax.block_until_ready(pb_a(cube_a))
    ref_a = pb_a.pb_mask * cube_a
    np.testing.assert_allclose(np.asarray(out_a), np.asarray(ref_a),
                               rtol=1e-6, atol=1e-6)

    # --- Case B: obscured dish, default bfloat16 mask, kernel path ---------
    pb_b = PrimaryBeamCube(cell_size, npix, nchan=nchan, chan_freqs=chan_freqs,
                           dish_type="obscured", dish_radius=dish_radius,
                           dish_obscured_radius=1.0)      # mask_dtype=bf16
    out_b = jax.block_until_ready(pb_b(cube_a))
    ref_b = pb_b.pb_mask.astype(jnp.float32) * cube_a
    np.testing.assert_allclose(np.asarray(out_b), np.asarray(ref_b),
                               rtol=1e-6, atol=1e-6)

    # --- Case C: element count not divisible by 1024 -> XLA fallback path --
    nchan_c, npix_c = 3, 16
    chan_freqs_c = np.array([2.30e11, 2.31e11, 2.32e11])
    pb_c = PrimaryBeamCube(cell_size, npix_c, nchan=nchan_c,
                           chan_freqs=chan_freqs_c,
                           dish_type="uniform", dish_radius=dish_radius,
                           mask_dtype=jnp.float32)
    cube_c = jax.random.uniform(key_c, (nchan_c, npix_c, npix_c),
                                dtype=jnp.float32)
    out_c = jax.block_until_ready(pb_c(cube_c))
    ref_c = pb_c.pb_mask * cube_c
    np.testing.assert_allclose(np.asarray(out_c), np.asarray(ref_c),
                               rtol=1e-6, atol=1e-6)

    print("KERNEL_OK")
</pallas_src>

<mosaic_0001>
module attributes {stable_mosaic.version = 11 : i64} {
  func.func @_pb_mul_kernel(%arg0: i32, %arg1: memref<8x512xf32, #tpu.memory_space<vmem>>, %arg2: memref<8x512xf32, #tpu.memory_space<vmem>>, %arg3: memref<8x512xf32, #tpu.memory_space<vmem>>) attributes {dimension_semantics = [#tpu.dimension_semantics<parallel>], iteration_bounds = array<i64: 4>, scalar_prefetch = 0 : i64, scratch_operands = 0 : i64, tpu.core_type = #tpu.core_type<tc>, window_params = [{transform_indices = @transform_0, window_bounds = array<i64: 8, 512>}, {transform_indices = @transform_1, window_bounds = array<i64: 8, 512>}, {transform_indices = @transform_2, window_bounds = array<i64: 8, 512>}]} {
    %c0 = arith.constant 0 : index
    %c0_0 = arith.constant 0 : index
    %0 = vector.load %arg1[%c0, %c0_0] : memref<8x512xf32, #tpu.memory_space<vmem>>, vector<8x512xf32>
    %c0_1 = arith.constant 0 : index
    %c0_2 = arith.constant 0 : index
    %1 = vector.load %arg2[%c0_1, %c0_2] : memref<8x512xf32, #tpu.memory_space<vmem>>, vector<8x512xf32>
    %2 = arith.mulf %0, %1 : vector<8x512xf32>
    %c0_3 = arith.constant 0 : index
    %c0_4 = arith.constant 0 : index
    %3 = vector.load %arg3[%c0_3, %c0_4] : memref<8x512xf32, #tpu.memory_space<vmem>>, vector<8x512xf32>
    tpu.vector_store %arg3[%c0_3, %c0_4], %2 {strides = array<i32>} : memref<8x512xf32, #tpu.memory_space<vmem>>, vector<8x512xf32>,
    return
  }
  func.func @transform_0(%arg0: i32) -> (i32, i32) {
    %c0_i32 = arith.constant 0 : i32
    %c0_i32_0 = arith.constant 0 : i32
    return %arg0, %c0_i32 : i32, i32
  }
  func.func @transform_1(%arg0: i32) -> (i32, i32) {
    %c0_i32 = arith.constant 0 : i32
    %c0_i32_0 = arith.constant 0 : i32
    return %arg0, %c0_i32 : i32, i32
  }
  func.func @transform_2(%arg0: i32) -> (i32, i32) {
    %c0_i32 = arith.constant 0 : i32
    %c0_i32_0 = arith.constant 0 : i32
    return %arg0, %c0_i32 : i32, i32
  }
}

</mosaic_0001>

<bundles_post_ra>
// kernel: tpu_custom_call.1
= control target key start
LH: loop header
LB: loop body
LE: loop exit
PB: predicated region body
PF: predicated region fallthrough
CT: control target
= control target key end

     0   :  { %7 = vsyncpa [#allocation3], 0  ;;  %s751_s0 = inlined_call_operand.hbm [shape: f32[32,512], index: 0, kind: input, shape index: {}]   ;;  %s752_s1 = inlined_call_operand.hbm [shape: f32[32,512], index: 1, kind: input, shape index: {}]   ;;  %s753_s2 = inlined_call_operand.hbm [shape: f32[32,512], index: 2, kind: output, shape index: {}]  }
   0x1   :  { %9 = vsyncpa [#allocation3 + $0x1], 0 }
   0x2   :  { %10 = vsyncpa [#allocation6], 0 }
   0x3   :  { %12 = vsyncpa [#allocation6 + $0x1], 0 }
   0x4   :  { %13 = vsyncpa [#allocation4], 0 }
   0x5   :  { %15 = vsyncpa [#allocation4 + $0x1], 0  ;;  %s544_s9 = smov 0   ;;  %s546_s10 = smov 0  }
   0x6   :  { %s548_s11 = smov 0   ;;  %s550_s12 = smov 0  }
   0x7 LB: > { %s565_s13 = sadd.s32 4294967295, %s524_s12   ;;  %s322_s14 = sadd.s32 4294967294, %s524_s12   ;;  %s524_s12 = sphi %s550_s12, %s771_s12   ;;  %s520_s11 = sphi %s548_s11, %s770_s11   ;;  %s516_s10 = sphi %s546_s10, %s769_s10   ;;  %s512_s9 = sphi %s544_s9, %s768_s9  }
   0x8   : > { %s569_s15 = sadd.s32 1, %s524_s12   ;;  %s28_s16 = sadd.s32 1, %s520_s11 }
   0x9   : > { %s25_s17 = ssub.s32 %s524_s12, %s569_s15  ;;  %p35_p0 = scmp.ne.s32.totalorder %s520_s11, %s516_s10 }
   0xa   : > { %p26_p1 = scmp.eq.s32.totalorder %s25_s17, 0  ;;  %p36_p2 = scmp.eq.s32.totalorder %s524_s12, 0 }
   0xb   : > { %p41_p3 = scmp.ne.s32.totalorder %s516_s10, %s512_s9  ;;  %p42_p4 = scmp.eq.s32.totalorder %s565_s13, 0 }
   0xc   : > { %s581_s18 = scalar_select %p26_p1, %s520_s11, %s28_s16  }
   0xd   : > { %p583_p5 = por %p36_p2, %p35_p0  ;;  %p587_p6 = por %p42_p4, %p41_p3 }
   0xe   : > { %p91_p7 = scmp.eq.s32.totalorder %s565_s13, 3  ;;  %p97_p8 = scmp.eq.s32.totalorder %s322_s14, 3 }
   0xf   : > { %s757_s20 = scalar_select %p587_p6, 1, 0 }
  0x10   : > { %p360_p9 = scmp.lt.s32.totalorder %s524_s12, 4  ;;  %p593_p10 = por %p91_p7, %p35_p0 }
  0x11   : > { %p597_p11 = por %p97_p8, %p41_p3  ;;  %s602_s23 = sand.u32 1, %s520_s11  }
  0x12   : > { %s758_s21 = scalar_select %p593_p10, 1, 0 }
  0x13   : > { %s759_s22 = scalar_select %p597_p11, 1, 0 }
  0x14   : > { %s340_s24 = sshll.u32 %s524_s12, 9  ;;  %s325_s25 = sshll.u32 %s602_s23, 5 }
  0x15   : > { %s611_s28 = scalar_lea.hbm %s751_s0, %s340_s24  ;;  %s121_s29 = scalar_lea.vmem [#allocation2], %s325_s25 }
  0x16   : > { %s129_s30 = sshll.u32 %s121_s29, 4  ;;  %p617_p12 = pnand %p360_p9, %p583_p5  ;;  %s621_s30 = int_to_ptr.vmem [resolvable:$true] %s129_s30 }
  0x17   : > { %s118_s4 = scalar_lea.sflag [#allocation3], %s602_s23  ;;  %s394_s5 = scalar_lea.hbm %s611_s28, 512 }
  0x18   : > { %p395_p1 = scmp.ne.s32.totalorder %s611_s28, %s394_s5  ;;  %p396_p2 = pneg %p617_p12 }
  0x19   : > { %s399_s8 = scalar_lea.hbm %s751_s0, 2048  ;;  %p400_p5 = scmp.lt.u32.totalorder %s611_s28, %s751_s0 }
  0x1a   : > { %p397_p3 = pnand %p396_p2, %p395_p1  ;;  %p401_p7 = scmp.lt.u32.totalorder %s399_s8, %s394_s5 }
  0x1b   : > { %p403_p9 = scmp.lt.u32.totalorder %s394_s5, %s611_s28 }
  0x1c   : > { %p398_p4 = pneg %p397_p3  ;;  %p402_p8 = por %p401_p7, %p400_p5 }
  0x1e   : > { %p404_p13 = por %p403_p9, %p402_p8 }
  0x20   : > { %p405_p0 = pnand %p404_p13, %p398_p4 }
  0x22   : > { %408 = shalt.err (!%p405_p0)
}
  0x23   : > { %s409_s17 = scalar_lea.vmem %s621_s30, 512  ;;  %s526_s19 = smov [#allocation2]  }
  0x24   : > { %p410_p1 = scmp.ne.s32.totalorder %s621_s30, %s409_s17  ;;  %s414_s26 = sshll.u32 %s526_s19, 4  ;;  %s415_s26 = int_to_ptr.vmem [resolvable:$false] %s414_s26 }
  0x25   : > { %s416_s27 = scalar_lea.vmem %s415_s26, 1024  ;;  %p417_p10 = scmp.lt.s32.totalorder %s621_s30, %s415_s26 }
  0x26   : > { %p412_p3 = pnand %p410_p1, %p396_p2  ;;  %p418_p5 = scmp.lt.s32.totalorder %s416_s27, %s409_s17 }
  0x28   : > { %p413_p11 = pneg %p412_p3  ;;  %p419_p7 = por %p418_p5, %p417_p10 }
  0x2a   : > { %p420_p8 = pnand %p419_p7, %p413_p11 }
  0x2c   : > { %423 = shalt.err (!%p420_p8)
}
  0x2d   : > { %352 = dma.hbm_to_vmem [thread:$0]  (!%p617_p12), %s611_s28, 512, %s621_s30, %s118_s4  }
  0x2e   : > { %p761_p13 = scmp.lt.s32.totalorder %s524_s12, 5  ;;  %p762_p0 = scmp.ge.s32.totalorder %s524_s12, 1 }
  0x2f   : > { %s664_s7 = scalar_lea.hbm %s752_s1, %s340_s24  ;;  %s140_s8 = scalar_lea.vmem [#allocation5], %s325_s25 }
  0x30   : > { %p655_p4 = pnand %p762_p0, %p761_p13  ;;  %s148_s14 = sshll.u32 %s140_s8, 4  ;;  %s149_s14 = int_to_ptr.vmem [resolvable:$true] %s148_s14 }
  0x31   : > { %s137_s28 = scalar_lea.sflag [#allocation6], %s602_s23  ;;  %s424_s30 = scalar_lea.hbm %s664_s7, 512 }
  0x32   : > { %s763_s29 = scalar_select %p655_p4, 1, 0 }
  0x33   : > { %p425_p10 = scmp.ne.s32.totalorder %s664_s7, %s424_s30  ;;  %s429_s24 = scalar_lea.hbm %s752_s1, 2048 }
  0x34   : > { %p430_p1 = scmp.lt.u32.totalorder %s664_s7, %s752_s1  ;;  %p431_p3 = scmp.lt.u32.totalorder %s429_s24, %s424_s30 }
  0x35   : > { %p427_p11 = pnand %p425_p10, %p396_p2  ;;  %p433_p7 = scmp.lt.u32.totalorder %s424_s30, %s664_s7 }
  0x36   : > { %p432_p5 = por %p431_p3, %p430_p1 }
  0x37   : > { %p428_p9 = pneg %p427_p11 }
  0x38   : > { %p434_p8 = por %p433_p7, %p432_p5 }
  0x3a   : > { %p435_p13 = pnand %p434_p8, %p428_p9 }
  0x3c   : > { %438 = shalt.err (!%p435_p13)
}
  0x3d   : > { %s439_s23 = scalar_lea.vmem %s149_s14, 512  ;;  %s527_s25 = smov [#allocation5]  }
  0x3e   : > { %p440_p0 = scmp.ne.s32.totalorder %s149_s14, %s439_s23  ;;  %s444_s26 = sshll.u32 %s527_s25, 4  ;;  %s445_s26 = int_to_ptr.vmem [resolvable:$false] %s444_s26 }
  0x3f   : > { %s446_s27 = scalar_lea.vmem %s445_s26, 1024  ;;  %p447_p6 = scmp.lt.s32.totalorder %s149_s14, %s445_s26 }
  0x40   : > { %p442_p10 = pnand %p440_p0, %p396_p2  ;;  %p448_p4 = scmp.lt.s32.totalorder %s446_s27, %s439_s23 }
  0x42   : > { %p443_p11 = pneg %p442_p10  ;;  %p449_p1 = por %p448_p4, %p447_p6 }
  0x44   : > { %p450_p3 = pnand %p449_p1, %p443_p11 }
  0x46   : > { %453 = shalt.err (!%p450_p3)
}
  0x47   : > { %355 = dma.hbm_to_vmem [thread:$0]  (!%p617_p12), %s664_s7, 512, %s149_s14, %s137_s28  }
  0x48   : > { %p764_p9 = scmp.ne.s32.totalorder %s763_s29, 0 }
  0x49   : > { %s691_s5 = sand.u32 (!%p764_p9), 1, %s516_s10   ;;  %p765_p2 = scmp.ne.s32.totalorder (!%p764_p9), %s757_s20, 0 }
  0x4a   : > { %157 = sbr.rel (%p764_p9) target bundleno = 110 (0x6e), region = 28  ;;  %s332_s6 = sshll.u32 (!%p764_p9), %s691_s5, 5 }
  0x4b   : > { %s160_s8 = scalar_lea.sflag (!%p764_p9), [#allocation3], %s691_s5  ;;  %s163_s30 = scalar_lea.vmem (!%p764_p9), [#allocation2], %s332_s6 }
  0x51   : > { %499 = dma.done.wait (%p765_p2), %s160_s8, 512  }
  0x52   : > { %501 = vsyncadd (%p765_p2), %s160_s8, 4294966784  ;;  %s169_s3 = scalar_lea.sflag [#allocation6], %s691_s5  ;;  %s172_s7 = scalar_lea.vmem [#allocation5], %s332_s6 }
  0x53   : > { %503 = dma.done.wait (%p765_p2), %s169_s3, 512  }
  0x54   : > { %505 = vsyncadd (%p765_p2), %s169_s3, 4294966784  ;;  %v198_v0 = vld [vmem:[%s163_s30] sm:$0xff]  ;;  %s197_s29 = scalar_lea.vmem [#allocation7], %s332_s6  ;;  %v199_v2 = vld [vmem:[%s163_s30 + $0x8] sm:$0xff]  ;;  %s342_s28 = sshll.u32 %s565_s13, 9 }
  0x55   : > { %v202_v1 = vld [vmem:[%s172_s7] sm:$0xff]  ;;  %s229_s14 = sshll.u32 %s197_s29, 4  ;;  %v203_v4 = vld [vmem:[%s172_s7 + $0x8] sm:$0xff]  ;;  %v200_v5 = vld [vmem:[%s163_s30 + $0x10] sm:$0xff]  ;;  %s710_s13 = scalar_lea.hbm %s753_s2, %s342_s28  ;;  %s705_s14 = int_to_ptr.vmem [resolvable:$true] %s229_s14 }
  0x56   : > { %v206_v3 = vmul.f32 %v202_v1, %v198_v0  ;;  %v204_v6 = vld [vmem:[%s172_s7 + $0x10] sm:$0xff]  ;;  %v207_v7 = vmul.f32 %v203_v4, %v199_v2  ;;  %v201_v9 = vld [vmem:[%s163_s30 + $0x18] sm:$0xff]  ;;  %s215_s16 = scalar_lea.sflag [#allocation4], %s691_s5  ;;  %s454_s24 = scalar_lea.vmem %s705_s14, 512 }
  0x57   : > { %v208_v8 = vmul.f32 %v204_v6, %v200_v5  ;;  %v205_v10 = vld [vmem:[%s172_s7 + $0x18] sm:$0xff]  ;;  %p455_p6 = scmp.ne.s32.totalorder %s705_s14, %s454_s24  ;;  %p766_p12 = scmp.ne.s32.totalorder %s758_s21, 0 }
  0x58   : > { %210 = vst [vmem:[%s197_s29] sm:$0xff] %v206_v3  ;;  %v209_v11 = vmul.f32 %v205_v10, %v201_v9  ;;  %211 = vst [vmem:[%s197_s29 + $0x8] sm:$0xff] %v207_v7  ;;  %s528_s17 = smov [#allocation7]  }
  0x59   : > { %212 = vst [vmem:[%s197_s29 + $0x10] sm:$0xff] %v208_v8  ;;  %p456_p4 = pnand %p455_p6, %p766_p12  ;;  %s458_s19 = sshll.u32 %s528_s17, 4  ;;  %s459_s19 = int_to_ptr.vmem [resolvable:$false] %s458_s19 }
  0x5a   : > { %213 = vst [vmem:[%s197_s29 + $0x18] sm:$0xff] %v209_v11  ;;  %s460_s23 = scalar_lea.vmem %s459_s19, 1024  ;;  %p461_p7 = scmp.lt.s32.totalorder %s705_s14, %s459_s19 }
  0x5b   : > { %p457_p5 = pneg %p456_p4  ;;  %p462_p8 = scmp.lt.s32.totalorder %s460_s23, %s454_s24 }
  0x5d   : > { %p463_p13 = por %p462_p8, %p461_p7 }
  0x5f   : > { %p464_p0 = pnand %p463_p13, %p457_p5 }
  0x61   : > { %467 = shalt.err (!%p464_p0)
}
  0x62   : > { %s468_s25 = scalar_lea.hbm %s710_s13, 512  ;;  %s472_s5 = scalar_lea.hbm %s753_s2, 2048 }
  0x63   : > { %p469_p10 = scmp.ne.s32.totalorder %s710_s13, %s468_s25  ;;  %p473_p3 = scmp.lt.u32.totalorder %s710_s13, %s753_s2 }
  0x64   : > { %p474_p9 = scmp.lt.u32.totalorder %s472_s5, %s468_s25  ;;  %p476_p6 = scmp.lt.u32.totalorder %s468_s25, %s710_s13 }
  0x65   : > { %p470_p11 = pnand %p469_p10, %p766_p12 }
  0x66   : > { %p475_p2 = por %p474_p9, %p473_p3 }
  0x67   : > { %p471_p1 = pneg %p470_p11 }
  0x68   : > { %p477_p4 = por %p476_p6, %p475_p2 }
  0x6a   : > { %p478_p5 = pnand %p477_p4, %p471_p1 }
  0x6c   : > { %481 = shalt.err (!%p478_p5)
}
  0x6d   : > { %347 = dma.vmem_to_hbm [thread:$0]  (%p766_p12), %s705_s14, 512, %s710_s13, %s215_s16  }
  0x6e PF: > { %p361_p7 = scmp.ge.s32.totalorder %s524_s12, 2  ;;  %s241_s30 = sand.u32 1, %s512_s9  }
  0x6f   : > { %p767_p8 = scmp.ne.s32.totalorder %s759_s22, 0  ;;  %s242_s3 = scalar_lea.sflag [#allocation4], %s241_s30 }
  0x71   : > { %p357_p13 = pnand %p361_p7, %p767_p8 }
  0x73   : > { %507 = dma.done.wait (!%p357_p13), %s242_s3, 512  }
  0x74   : > { %509 = vsyncadd (!%p357_p13), %s242_s3, 4294966784  ;;  %p18_p0 = scmp.ge.s32.totalorder %s569_s15, 6   ;;  %s768_s9 = smov %s516_s10 }
  0x75   : > { %s769_s10 = smov %s520_s11  ;;  %s770_s11 = smov %s581_s18 }
  0x76   : > { %s771_s12 = smov %s569_s15  ;;  %20 = sbr.rel (!%p18_p0) target bundleno = 7 (0x7), region = 86 }
  0x7d   :  { %247 = vsyncpa [#allocation3], 1 }
  0x7e   :  { %249 = vsyncpa [#allocation3 + $0x1], 1 }
  0x7f   :  { %250 = vsyncpa [#allocation6], 1 }
  0x80   :  { %252 = vsyncpa [#allocation6 + $0x1], 1 }
  0x81   :  { %253 = vsyncpa [#allocation4], 1 }
  0x82   :  { %255 = vsyncpa [#allocation4 + $0x1], 1 }

</bundles_post_ra>
